<compile_context>
chip_gen: v6e
topology: v6e:2x2x1
jax: 0.10.0
libtpu: 0.0.40
codegen_flags: <defaults>
</compile_context>

<pallas_src>
import functools

import jax
import jax.numpy as jnp
from jax.experimental import pallas as pl
from jax.experimental.pallas import tpu as pltpu


def _round_up(x, m):
    return ((x + m - 1) // m) * m


def _valnet_kernel(x_ref, w1_ref, b1_ref, w2_ref, b2_ref, w3_ref, b3_ref,
                   w4_ref, b4_ref, o_ref, *, compute_dtype):
    """Fused 4-layer MLP for one batch tile; writes one lane-dense row."""

    def dense_relu(h, w_ref, b_ref):
        acc = jnp.dot(h.astype(compute_dtype),
                      w_ref[...].astype(compute_dtype),
                      preferred_element_type=jnp.float32)
        return jnp.maximum(acc + b_ref[...], 0.0)

    h = x_ref[...]                               # (tb, S) f32
    h = dense_relu(h, w1_ref, b1_ref)            # (tb, 128)
    h = dense_relu(h, w2_ref, b2_ref)            # (tb, 128)
    h = dense_relu(h, w3_ref, b3_ref)            # (tb, 128)

    # Final layer has out_features == 1: VPU multiply + lane (XLU) reduction
    # instead of an N=1 matmul; result stored as a lane-dense (1, tb) row.
    v = jnp.sum(h * w4_ref[...], axis=-1)        # (tb,) f32
    o_ref[...] = (v[None, :] + b4_ref[...]).astype(o_ref.dtype)


@functools.partial(jax.jit, static_argnames=("block_b", "compute_dtype"))
def val_network_forward(state, params, block_b=512, compute_dtype=jnp.float32):
    """state: (B, state_dim) f32.  params: dict (weights pre-transposed)."""
    B, S = state.shape
    w1, b1 = params["w1"], params["b1"]   # (S, 128),   (1, 128)
    w2, b2 = params["w2"], params["b2"]   # (128, 128), (1, 128)
    w3, b3 = params["w3"], params["b3"]   # (128, 128), (1, 128)
    w4, b4 = params["w4"], params["b4"]   # (1, 128),   (1, 1)

    # Keep the batch tile a multiple of 128 (lane-dense output stores) and
    # clamp it for small batches.  All trace-time Python ints.
    block_b = min(_round_up(block_b, 128), _round_up(B, 128))
    num_tiles = (B + block_b - 1) // block_b

    def full_spec(arr):
        nd = arr.ndim
        return pl.BlockSpec(arr.shape, lambda i: (0,) * nd)

    out_tiles = pl.pallas_call(
        functools.partial(_valnet_kernel, compute_dtype=compute_dtype),
        out_shape=jax.ShapeDtypeStruct((num_tiles, block_b), jnp.float32),
        grid_spec=pltpu.PrefetchScalarGridSpec(
            num_scalar_prefetch=0,
            grid=(num_tiles,),
            in_specs=[
                pl.BlockSpec((block_b, S), lambda i: (i, 0)),
                full_spec(w1), full_spec(b1),
                full_spec(w2), full_spec(b2),
                full_spec(w3), full_spec(b3),
                full_spec(w4), full_spec(b4),
            ],
            out_specs=pl.BlockSpec((1, block_b), lambda i: (i, 0)),
        ),
        compiler_params=pltpu.CompilerParams(
            dimension_semantics=("parallel",)),
    )(state, w1, b1, w2, b2, w3, b3, w4, b4)

    # Rows >= B in the last tile are padding (garbage inputs, per-row
    # independent math) -> slice them off.
    return out_tiles.reshape(-1)[:B].reshape(B, 1)


def init_params(key, state_dim, hidden=128):
    """PyTorch nn.Linear default init: U(-1/sqrt(fan_in), 1/sqrt(fan_in)).
    Weights stored transposed as (in_features, out_features); the final
    (hidden, 1) weight is stored as a lane-dense (1, hidden) row."""
    dims = [(state_dim, hidden), (hidden, hidden), (hidden, hidden), (hidden, 1)]
    params = {}
    for idx, (fan_in, fan_out) in enumerate(dims, start=1):
        key, kw, kb = jax.random.split(key, 3)
        bound = float(fan_in) ** -0.5
        params[f"w{idx}"] = jax.random.uniform(
            kw, (fan_in, fan_out), jnp.float32, -bound, bound)
        params[f"b{idx}"] = jax.random.uniform(
            kb, (1, fan_out), jnp.float32, -bound, bound)
    params["w4"] = params["w4"].T   # (1, hidden) lane-dense row
    return params


def _reference_forward(state, params):
    h = jnp.maximum(state @ params["w1"] + params["b1"], 0.0)
    h = jnp.maximum(h @ params["w2"] + params["b2"], 0.0)
    h = jnp.maximum(h @ params["w3"] + params["b3"], 0.0)
    return h @ params["w4"].T + params["b4"]


if __name__ == "__main__":
    key = jax.random.PRNGKey(0)
    k_params, k_small, k_big = jax.random.split(key, 3)

    state_dim = 6   # HIV environment state dimension
    params = init_params(k_params, state_dim)

    # Small inference-style batch (single tile, clamped block).
    state = jax.random.normal(k_small, (8, state_dim), jnp.float32)
    out = jax.block_until_ready(val_network_forward(state, params))
    ref = _reference_forward(state, params)
    assert out.shape == (8, 1), out.shape
    assert jnp.allclose(out, ref, atol=1e-4, rtol=1e-4), (
        f"small-batch mismatch: max err {float(jnp.max(jnp.abs(out - ref)))}")

    # Rollout-style batch: multi-tile grid + partial last tile.
    big = jax.random.normal(k_big, (1000, state_dim), jnp.float32)
    out_big = jax.block_until_ready(
        val_network_forward(big, params, block_b=512))
    ref_big = _reference_forward(big, params)
    assert out_big.shape == (1000, 1), out_big.shape
    assert jnp.allclose(out_big, ref_big, atol=1e-4, rtol=1e-4), (
        f"big-batch mismatch: max err {float(jnp.max(jnp.abs(out_big - ref_big)))}")

    # bf16 MXU-input fast path (v6e/v7x): f32 accumulation, loose tolerance.
    out_bf16 = jax.block_until_ready(
        val_network_forward(big, params, block_b=512,
                            compute_dtype=jnp.bfloat16))
    assert bool(jnp.all(jnp.isfinite(out_bf16)))
    assert jnp.allclose(out_bf16, ref_big, atol=1e-1, rtol=1e-1), (
        f"bf16 mismatch: max err {float(jnp.max(jnp.abs(out_bf16 - ref_big)))}")

    print("KERNEL_OK")
</pallas_src>

<mosaic_0001>
module attributes {stable_mosaic.version = 11 : i64} {
  func.func @_valnet_kernel(%arg0: i32, %arg1: memref<128x6xf32, #tpu.memory_space<vmem>>, %arg2: memref<6x128xf32, #tpu.memory_space<vmem>>, %arg3: memref<1x128xf32, #tpu.memory_space<vmem>>, %arg4: memref<128x128xf32, #tpu.memory_space<vmem>>, %arg5: memref<1x128xf32, #tpu.memory_space<vmem>>, %arg6: memref<128x128xf32, #tpu.memory_space<vmem>>, %arg7: memref<1x128xf32, #tpu.memory_space<vmem>>, %arg8: memref<1x128xf32, #tpu.memory_space<vmem>>, %arg9: memref<1x1xf32, #tpu.memory_space<vmem>>, %arg10: memref<1x128xf32, #tpu.memory_space<vmem>>) attributes {dimension_semantics = [#tpu.dimension_semantics<parallel>], iteration_bounds = array<i64: 1>, scalar_prefetch = 0 : i64, scratch_operands = 0 : i64, tpu.core_type = #tpu.core_type<tc>, window_params = [{transform_indices = @transform_0, window_bounds = array<i64: 128, 6>}, {pipeline_mode = #tpu.pipeline_mode<synchronous>, transform_indices = @transform_1, window_bounds = array<i64: 6, 128>}, {pipeline_mode = #tpu.pipeline_mode<synchronous>, transform_indices = @transform_2, window_bounds = array<i64: 1, 128>}, {pipeline_mode = #tpu.pipeline_mode<synchronous>, transform_indices = @transform_3, window_bounds = array<i64: 128, 128>}, {pipeline_mode = #tpu.pipeline_mode<synchronous>, transform_indices = @transform_4, window_bounds = array<i64: 1, 128>}, {pipeline_mode = #tpu.pipeline_mode<synchronous>, transform_indices = @transform_5, window_bounds = array<i64: 128, 128>}, {pipeline_mode = #tpu.pipeline_mode<synchronous>, transform_indices = @transform_6, window_bounds = array<i64: 1, 128>}, {pipeline_mode = #tpu.pipeline_mode<synchronous>, transform_indices = @transform_7, window_bounds = array<i64: 1, 128>}, {pipeline_mode = #tpu.pipeline_mode<synchronous>, transform_indices = @transform_8, window_bounds = array<i64: 1, 1>}, {transform_indices = @transform_9, window_bounds = array<i64: 1, 128>}]} {
    %c0 = arith.constant 0 : index
    %c0_0 = arith.constant 0 : index
    %0 = vector.load %arg1[%c0, %c0_0] : memref<128x6xf32, #tpu.memory_space<vmem>>, vector<128x6xf32>
    %c0_1 = arith.constant 0 : index
    %c0_2 = arith.constant 0 : index
    %1 = vector.load %arg2[%c0_1, %c0_2] : memref<6x128xf32, #tpu.memory_space<vmem>>, vector<6x128xf32>
    %cst = arith.constant dense<0.000000e+00> : vector<128x128xf32>
    %2 = tpu.matmul %0, %1, %cst {dimension_numbers = #tpu.dot_dimension_numbers<[1], [0], [0], [1], [0, 0, 1, 1], [], []>} : vector<128x6xf32>, vector<6x128xf32>, vector<128x128xf32> -> vector<128x128xf32>
    %c0_3 = arith.constant 0 : index
    %c0_4 = arith.constant 0 : index
    %3 = vector.load %arg3[%c0_3, %c0_4] : memref<1x128xf32, #tpu.memory_space<vmem>>, vector<1x128xf32>
    %4 = vector.broadcast %3 : vector<1x128xf32> to vector<128x128xf32>
    %5 = arith.addf %2, %4 : vector<128x128xf32>
    %cst_5 = arith.constant 0.000000e+00 : f32
    %6 = vector.broadcast %cst_5 : f32 to vector<128x128xf32>
    %7 = arith.maximumf %5, %6 : vector<128x128xf32>
    %c0_6 = arith.constant 0 : index
    %c0_7 = arith.constant 0 : index
    %8 = vector.load %arg4[%c0_6, %c0_7] : memref<128x128xf32, #tpu.memory_space<vmem>>, vector<128x128xf32>
    %cst_8 = arith.constant dense<0.000000e+00> : vector<128x128xf32>
    %9 = tpu.matmul %7, %8, %cst_8 {dimension_numbers = #tpu.dot_dimension_numbers<[1], [0], [0], [1], [0, 0, 1, 1], [], []>} : vector<128x128xf32>, vector<128x128xf32>, vector<128x128xf32> -> vector<128x128xf32>
    %c0_9 = arith.constant 0 : index
    %c0_10 = arith.constant 0 : index
    %10 = vector.load %arg5[%c0_9, %c0_10] : memref<1x128xf32, #tpu.memory_space<vmem>>, vector<1x128xf32>
    %11 = vector.broadcast %10 : vector<1x128xf32> to vector<128x128xf32>
    %12 = arith.addf %9, %11 : vector<128x128xf32>
    %cst_11 = arith.constant 0.000000e+00 : f32
    %13 = vector.broadcast %cst_11 : f32 to vector<128x128xf32>
    %14 = arith.maximumf %12, %13 : vector<128x128xf32>
    %c0_12 = arith.constant 0 : index
    %c0_13 = arith.constant 0 : index
    %15 = vector.load %arg6[%c0_12, %c0_13] : memref<128x128xf32, #tpu.memory_space<vmem>>, vector<128x128xf32>
    %cst_14 = arith.constant dense<0.000000e+00> : vector<128x128xf32>
    %16 = tpu.matmul %14, %15, %cst_14 {dimension_numbers = #tpu.dot_dimension_numbers<[1], [0], [0], [1], [0, 0, 1, 1], [], []>} : vector<128x128xf32>, vector<128x128xf32>, vector<128x128xf32> -> vector<128x128xf32>
    %c0_15 = arith.constant 0 : index
    %c0_16 = arith.constant 0 : index
    %17 = vector.load %arg7[%c0_15, %c0_16] : memref<1x128xf32, #tpu.memory_space<vmem>>, vector<1x128xf32>
    %18 = vector.broadcast %17 : vector<1x128xf32> to vector<128x128xf32>
    %19 = arith.addf %16, %18 : vector<128x128xf32>
    %cst_17 = arith.constant 0.000000e+00 : f32
    %20 = vector.broadcast %cst_17 : f32 to vector<128x128xf32>
    %21 = arith.maximumf %19, %20 : vector<128x128xf32>
    %c0_18 = arith.constant 0 : index
    %c0_19 = arith.constant 0 : index
    %22 = vector.load %arg8[%c0_18, %c0_19] : memref<1x128xf32, #tpu.memory_space<vmem>>, vector<1x128xf32>
    %23 = vector.broadcast %22 : vector<1x128xf32> to vector<128x128xf32>
    %24 = arith.mulf %21, %23 : vector<128x128xf32>
    %cst_20 = arith.constant dense<0.000000e+00> : vector<128xf32>
    %25 = vector.multi_reduction <add>, %24, %cst_20 [1] : vector<128x128xf32> to vector<128xf32>
    %26 = vector.shape_cast %25 : vector<128xf32> to vector<1x128xf32>
    %c0_21 = arith.constant 0 : index
    %c0_22 = arith.constant 0 : index
    %27 = vector.load %arg9[%c0_21, %c0_22] : memref<1x1xf32, #tpu.memory_space<vmem>>, vector<1x1xf32>
    %28 = vector.broadcast %27 : vector<1x1xf32> to vector<1x128xf32>
    %29 = arith.addf %26, %28 : vector<1x128xf32>
    %c0_23 = arith.constant 0 : index
    %c0_24 = arith.constant 0 : index
    %30 = vector.load %arg10[%c0_23, %c0_24] : memref<1x128xf32, #tpu.memory_space<vmem>>, vector<1x128xf32>
    tpu.vector_store %arg10[%c0_23, %c0_24], %29 {strides = array<i32>} : memref<1x128xf32, #tpu.memory_space<vmem>>, vector<1x128xf32>,
    return
  }
  func.func @transform_0(%arg0: i32) -> (i32, i32) {
    %c0_i32 = arith.constant 0 : i32
    %c0_i32_0 = arith.constant 0 : i32
    return %arg0, %c0_i32 : i32, i32
  }
  func.func @transform_1(%arg0: i32) -> (i32, i32) {
    %c0_i32 = arith.constant 0 : i32
    %c0_i32_0 = arith.constant 0 : i32
    %c0_i32_1 = arith.constant 0 : i32
    return %c0_i32, %c0_i32_0 : i32, i32
  }
  func.func @transform_2(%arg0: i32) -> (i32, i32) {
    %c0_i32 = arith.constant 0 : i32
    %c0_i32_0 = arith.constant 0 : i32
    %c0_i32_1 = arith.constant 0 : i32
    return %c0_i32, %c0_i32_0 : i32, i32
  }
  func.func @transform_3(%arg0: i32) -> (i32, i32) {
    %c0_i32 = arith.constant 0 : i32
    %c0_i32_0 = arith.constant 0 : i32
    %c0_i32_1 = arith.constant 0 : i32
    return %c0_i32, %c0_i32_0 : i32, i32
  }
  func.func @transform_4(%arg0: i32) -> (i32, i32) {
    %c0_i32 = arith.constant 0 : i32
    %c0_i32_0 = arith.constant 0 : i32
    %c0_i32_1 = arith.constant 0 : i32
    return %c0_i32, %c0_i32_0 : i32, i32
  }
  func.func @transform_5(%arg0: i32) -> (i32, i32) {
    %c0_i32 = arith.constant 0 : i32
    %c0_i32_0 = arith.constant 0 : i32
    %c0_i32_1 = arith.constant 0 : i32
    return %c0_i32, %c0_i32_0 : i32, i32
  }
  func.func @transform_6(%arg0: i32) -> (i32, i32) {
    %c0_i32 = arith.constant 0 : i32
    %c0_i32_0 = arith.constant 0 : i32
    %c0_i32_1 = arith.constant 0 : i32
    return %c0_i32, %c0_i32_0 : i32, i32
  }
  func.func @transform_7(%arg0: i32) -> (i32, i32) {
    %c0_i32 = arith.constant 0 : i32
    %c0_i32_0 = arith.constant 0 : i32
    %c0_i32_1 = arith.constant 0 : i32
    return %c0_i32, %c0_i32_0 : i32, i32
  }
  func.func @transform_8(%arg0: i32) -> (i32, i32) {
    %c0_i32 = arith.constant 0 : i32
    %c0_i32_0 = arith.constant 0 : i32
    %c0_i32_1 = arith.constant 0 : i32
    return %c0_i32, %c0_i32_0 : i32, i32
  }
  func.func @transform_9(%arg0: i32) -> (i32, i32) {
    %c0_i32 = arith.constant 0 : i32
    %c0_i32_0 = arith.constant 0 : i32
    return %arg0, %c0_i32 : i32, i32
  }
}

</mosaic_0001>

<bundles_post_ra>
// kernel: val_network_forward.1
= control target key start
LH: loop header
LB: loop body
LE: loop exit
PB: predicated region body
PF: predicated region fallthrough
CT: control target
= control target key end

     0   :  { %s1474_s0 = inlined_call_operand.hbm [shape: f32[8,6], index: 0, kind: input, shape index: {}]   ;;  %s1475_s1 = inlined_call_operand.vmem [shape: f32[6,128], index: 1, kind: input, shape index: {}]   ;;  %s1476_s2 = inlined_call_operand.vmem [shape: f32[1,128], index: 2, kind: input, shape index: {}]   ;;  %s1477_s3 = inlined_call_operand.hbm [shape: f32[128,128], index: 3, kind: input, shape index: {}]   ;;  %s1478_s4 = inlined_call_operand.hbm [shape: f32[1,128], index: 4, kind: input, shape index: {}]   ;;  %s1479_s5 = inlined_call_operand.hbm [shape: f32[128,128], index: 5, kind: input, shape index: {}]   ;;  %s1480_s6 = inlined_call_operand.hbm [shape: f32[1,128], index: 6, kind: input, shape index: {}]   ;;  %s1481_s7 = inlined_call_operand.vmem [shape: f32[1,128], index: 7, kind: input, shape index: {}]   ;;  %s1482_s8 = inlined_call_operand.<no memory space> [shape: f32[1,1], index: 8, kind: input, shape index: {}]   ;;  %s1483_s9 = inlined_call_operand.vmem [shape: f32[1,128], index: 9, kind: output, shape index: {}]  }
   0x1   :  { %v14_v0 = vstv %s1482_s8 }
   0x2   :  { %15 = vst [vmem:[#allocation2] sm:$0x1] %v14_v0 }
   0x3   :  { %16 = vsyncpa [#allocation4], 0 }
   0x4   :  { %17 = vsyncpa [#allocation6], 0 }
   0x5   :  { %18 = vsyncpa [#allocation9], 0 }
   0x6   :  { %23 = vsyncadd [#allocation4], 1920  ;;  %s1277_s11 = smov [#allocation5]   ;;  %s1278_s13 = smov [#allocation8]  }
   0x7   :  { %s40_s12 = sshll.u32 %s1277_s11, 4  ;;  %s62_s14 = sshll.u32 %s1278_s13, 4  ;;  %s41_s12 = int_to_ptr.vmem [resolvable:$true] %s40_s12  ;;  %s63_s14 = int_to_ptr.vmem [resolvable:$true] %s62_s14 }
   0x8   :  { %s1179_s15 = scalar_lea.vmem %s41_s12, 2048  ;;  %p1184_p1 = scmp.lt.s32.totalorder %s41_s12, %s41_s12 }
   0x9   :  { %p1180_p0 = scmp.ne.s32.totalorder %s41_s12, %s1179_s15  ;;  %p1185_p2 = scmp.lt.s32.totalorder %s1179_s15, %s1179_s15 }
   0xb   :  { %p1186_p3 = por %p1185_p2, %p1184_p1 }
   0xd   :  { %p1187_p4 = pnand %p1186_p3, %p1180_p0 }
   0xf   :  { %1190 = shalt.err (!%p1187_p4)
}
  0x10   :  { %s1279_s16 = smov 128   ;;  %s1280_s8 = smov 8  }
  0x11   :  { %46 = dma.hbm_to_vmem [thread:$0]  %s1477_s3, 2048, %s41_s12, [#allocation6], %s1279_s16, %s1279_s16, %s1280_s8  }
  0x12   :  { %s1199_s19 = scalar_lea.vmem %s63_s14, 2048  ;;  %p1204_p6 = scmp.lt.s32.totalorder %s63_s14, %s63_s14 }
  0x13   :  { %p1200_p5 = scmp.ne.s32.totalorder %s63_s14, %s1199_s19  ;;  %p1205_p7 = scmp.lt.s32.totalorder %s1199_s19, %s1199_s19 }
  0x15   :  { %p1206_p8 = por %p1205_p7, %p1204_p6 }
  0x17   :  { %p1207_p9 = pnand %p1206_p8, %p1200_p5 }
  0x19   :  { %1210 = shalt.err (!%p1207_p9)
}
  0x1a   :  { %68 = dma.hbm_to_vmem [thread:$0]  %s1479_s5, 2048, %s63_s14, [#allocation9], %s1279_s16, %s1279_s16, %s1280_s8  }
  0x1b   :  { %s1281_s22 = smov [#allocation3]   ;;  %s1282_s24 = smov [#allocation7]  }
  0x1c   :  { %s24_s23 = sshll.u32 %s1281_s22, 4  ;;  %s53_s25 = sshll.u32 %s1282_s24, 4  ;;  %s25_s23 = int_to_ptr.vmem [resolvable:$true] %s24_s23  ;;  %s54_s25 = int_to_ptr.vmem [resolvable:$true] %s53_s25 }
  0x1d   :  { %s1219_s26 = scalar_lea.vmem %s25_s23, 128  ;;  %s1223_s3 = scalar_lea.vmem %s25_s23, 2048 }
  0x1e   :  { %p1220_p10 = scmp.ne.s32.totalorder %s25_s23, %s1219_s26  ;;  %p1224_p11 = scmp.lt.s32.totalorder %s25_s23, %s25_s23 }
  0x1f   :  { %p1225_p12 = scmp.lt.s32.totalorder %s1223_s3, %s1219_s26 }
  0x21   :  { %p1226_p13 = por %p1225_p12, %p1224_p11 }
  0x23   :  { %p1227_p0 = pnand %p1226_p13, %p1220_p10 }
  0x25   :  { %1230 = shalt.err (!%p1227_p0)
}
  0x26   :  { %30 = dma.hbm_to_vmem [thread:$0]  %s1474_s0, 128, %s25_s23, [#allocation4], %s1279_s16, %s1279_s16, %s1280_s8  }
  0x27   :  { %s1239_s29 = scalar_lea.vmem %s54_s25, 16  ;;  %s1243_s5 = scalar_lea.vmem %s54_s25, 32 }
  0x28   :  { %p1240_p1 = scmp.ne.s32.totalorder %s54_s25, %s1239_s29  ;;  %p1244_p2 = scmp.lt.s32.totalorder %s54_s25, %s54_s25 }
  0x29   :  { %p1245_p3 = scmp.lt.s32.totalorder %s1243_s5, %s1239_s29 }
  0x2b   :  { %p1246_p4 = por %p1245_p3, %p1244_p2 }
  0x2d   :  { %p1247_p5 = pnand %p1246_p4, %p1240_p1 }
  0x2f   :  { %1250 = shalt.err (!%p1247_p5)
}
  0x30   :  { %56 = dma.hbm_to_vmem [thread:$0]  %s1478_s4, 16, %s54_s25, [#allocation6]  }
  0x31   :  { %s1283_s11 = smov [#allocation10]  }
  0x32   :  { %s75_s12 = sshll.u32 %s1283_s11, 4  ;;  %s76_s12 = int_to_ptr.vmem [resolvable:$true] %s75_s12 }
  0x33   :  { %s1259_s13 = scalar_lea.vmem %s76_s12, 16  ;;  %s1263_s14 = scalar_lea.vmem %s76_s12, 32 }
  0x34   :  { %p1260_p6 = scmp.ne.s32.totalorder %s76_s12, %s1259_s13  ;;  %p1264_p7 = scmp.lt.s32.totalorder %s76_s12, %s76_s12 }
  0x35   :  { %p1265_p8 = scmp.lt.s32.totalorder %s1263_s14, %s1259_s13 }
  0x37   :  { %p1266_p9 = por %p1265_p8, %p1264_p7 }
  0x39   :  { %p1267_p10 = pnand %p1266_p9, %p1260_p6 }
  0x3b   :  { %1270 = shalt.err (!%p1267_p10)
}
  0x3c   :  { %78 = dma.hbm_to_vmem [thread:$0]  %s1480_s6, 16, %s76_s12, [#allocation9]  }
  0x3d   :  { %1271 = dma.done.wait [#allocation4], 2048  }
  0x3e   :  { %1272 = vsyncadd [#allocation4], 4294965248 }
  0x3f   :  { %1273 = dma.done.wait [#allocation6], 2064  }
  0x40   :  { %1274 = vsyncadd [#allocation6], 4294965232 }
  0x41   :  { %1275 = dma.done.wait [#allocation9], 2064  }
  0x42   :  { %1276 = vsyncadd [#allocation9], 4294965232  ;;  %vm171_vm0 = vcmask 1045504   ;;  %vm122_vm1 = vcmask 48128   ;;  %v114_v1 = vld [vmem:[%s1475_s1] sm:$0x3f] }
  0x43   :  { %v98_v2 = vld [vmem:[#allocation3] sm:$0xff]  ;;  %v99_v3 = vld [vmem:[#allocation3 + $0x8] sm:$0xff]  ;;  %1023 = vmatprep.subr.msk.mxu0 %vm171_vm0, %v114_v1  ;;  %v100_v4 = vld [vmem:[#allocation3 + $0x10] sm:$0xff]  ;;  %vm812_vm2 = vcmask 130112   ;;  %vm819_vm3 = vcmask 195712   ;;  %vm826_vm4 = vcmask 261312  }
  0x44   :  { %1025 = vmatprep.mubr.msk.f32.mxu0 %vm122_vm1, %v98_v2  ;;  %1024 = vmatpush3.msk.msra.mxu0 %vm171_vm0, %v114_v1  ;;  %v101_v5 = vld [vmem:[#allocation3 + $0x18] sm:$0xff]  ;;  %v102_v6 = vld [vmem:[#allocation3 + $0x20] sm:$0xff]  ;;  %v350_v8 = vld [vmem:[#allocation5 + $0x70] sm:$0xff]  ;;  %vm833_vm5 = vcmask 326912   ;;  %vm840_vm6 = vcmask 392512   ;;  %vm847_vm7 = vcmask 458112  }
  0x45   :  { %1026 = vmatmul.mubr.msk.f32.vlgmr.msra.gmra.mxu0 %vm122_vm1, %v99_v3  ;;  %v351_v7 = vld [vmem:[#allocation5 + $0x78] sm:$0xff]  ;;  %v349_v9 = vld [vmem:[#allocation5 + $0x68] sm:$0xff]  ;;  %v104_v11 = vld [vmem:[#allocation3 + $0x30] sm:$0xff]  ;;  %vm854_vm8 = vcmask 523712   ;;  %vm861_vm9 = vcmask 589312   ;;  %vm868_vm10 = vcmask 654912  }
  0x46   :  { %1028 = vmatprep.mubr.msk.f32.mxu0 %vm122_vm1, %v100_v4  ;;  %1049 = vmatprep.subr.mxu1 %v351_v7  ;;  %v103_v10 = vld [vmem:[#allocation3 + $0x28] sm:$0xff]  ;;  %v348_v12 = vld [vmem:[#allocation5 + $0x60] sm:$0xff]  ;;  %v347_v13 = vld [vmem:[#allocation5 + $0x58] sm:$0xff]  ;;  %vm875_vm11 = vcmask 720512   ;;  %vm882_vm12 = vcmask 786112   ;;  %vm889_vm13 = vcmask 851712  }
  0x47   :  { %1050 = vmatpush3.msra.mxu1 %v351_v7  ;;  %v105_v14 = vld [vmem:[#allocation3 + $0x38] sm:$0xff]  ;;  %v106_v15 = vld [vmem:[#allocation3 + $0x40] sm:$0xff]  ;;  %v346_v16 = vld [vmem:[#allocation5 + $0x50] sm:$0xff]  ;;  %vm896_vm14 = vcmask 917312   ;;  %vm903_vm15 = vcmask 982912   ;;  %vm910_vm0 = vcmask 1048512  }
  0x48   :  { %1051 = vmatprep.subr.mxu1 %v350_v8  ;;  %v345_v17 = vld [vmem:[#allocation5 + $0x48] sm:$0xff]  ;;  %v108_v19 = vld [vmem:[#allocation3 + $0x50] sm:$0xff]  ;;  %v344_v20 = vld [vmem:[#allocation5 + $0x40] sm:$0xff] }
  0x49   :  { %1029 = vmatmul.mubr.msk.f32.gmra.mxu0 %vm122_vm1, %v101_v5  ;;  %1052 = vmatpush3.msra.mxu1 %v350_v8  ;;  %v107_v18 = vld [vmem:[#allocation3 + $0x48] sm:$0xff]  ;;  %v343_v21 = vld [vmem:[#allocation5 + $0x38] sm:$0xff]  ;;  %v110_v23 = vld [vmem:[#allocation3 + $0x60] sm:$0xff] }
  0x4a   :  { %1031 = vmatprep.mubr.msk.f32.mxu0 %vm122_vm1, %v102_v6  ;;  %1053 = vmatprep.subr.mxu1 %v349_v9  ;;  %v109_v22 = vld [vmem:[#allocation3 + $0x58] sm:$0xff]  ;;  %v342_v24 = vld [vmem:[#allocation5 + $0x30] sm:$0xff]  ;;  %v341_v25 = vld [vmem:[#allocation5 + $0x28] sm:$0xff] }
  0x4b   :  { %1054 = vmatpush3.msra.mxu1 %v349_v9  ;;  %v111_v26 = vld [vmem:[#allocation3 + $0x68] sm:$0xff]  ;;  %v112_v27 = vld [vmem:[#allocation3 + $0x70] sm:$0xff]  ;;  %v340_v28 = vld [vmem:[#allocation5 + $0x20] sm:$0xff] }
  0x4c   :  { %1055 = vmatprep.subr.mxu1 %v348_v12  ;;  %v113_v29 = vld [vmem:[#allocation3 + $0x78] sm:$0xff]  ;;  %v338_v31 = vld [vmem:[#allocation5 + $0x10] sm:$0xff]  ;;  %v337_v32 = vld [vmem:[#allocation5 + $0x8] sm:$0xff] }
  0x4d   :  { %1032 = vmatmul.mubr.msk.f32.gmra.mxu0 %vm122_vm1, %v103_v10  ;;  %1056 = vmatpush3.msra.mxu1 %v348_v12  ;;  %v339_v30 = vld [vmem:[#allocation5 + $0x18] sm:$0xff]  ;;  %v336_v33 = vld [vmem:[#allocation5] sm:$0xff]  ;;  %v533_v36 = vld [vmem:[#allocation8 + $0x68] sm:$0xff] }
  0x4e   :  { %1034 = vmatprep.mubr.msk.f32.mxu0 %vm122_vm1, %v104_v11  ;;  %1057 = vmatprep.subr.mxu1 %v347_v13  ;;  %v535_v34 = vld [vmem:[#allocation8 + $0x78] sm:$0xff]  ;;  %v534_v35 = vld [vmem:[#allocation8 + $0x70] sm:$0xff]  ;;  %v532_v37 = vld [vmem:[#allocation8 + $0x60] sm:$0xff] }
  0x4f   :  { %1058 = vmatpush3.msra.mxu1 %v347_v13  ;;  %1105 = vmatprep.subr.mxu0 %v535_v34  ;;  %v531_v38 = vld [vmem:[#allocation8 + $0x58] sm:$0xff]  ;;  %v530_v39 = vld [vmem:[#allocation8 + $0x50] sm:$0xff]  ;;  %v529_v40 = vld [vmem:[#allocation8 + $0x48] sm:$0xff] }
  0x50   :  { %1059 = vmatprep.subr.mxu1 %v346_v16  ;;  %1106 = vmatpush3.msra.mxu0 %v535_v34  ;;  %v528_v41 = vld [vmem:[#allocation8 + $0x40] sm:$0xff]  ;;  %v527_v42 = vld [vmem:[#allocation8 + $0x38] sm:$0xff]  ;;  %v526_v43 = vld [vmem:[#allocation8 + $0x30] sm:$0xff] }
  0x51   :  { %1035 = vmatmul.mubr.msk.f32.gmra.mxu0 %vm122_vm1, %v105_v14  ;;  %1060 = vmatpush3.msra.mxu1 %v346_v16  ;;  %v525_v44 = vld [vmem:[#allocation8 + $0x28] sm:$0xff]  ;;  %v524_v45 = vld [vmem:[#allocation8 + $0x20] sm:$0xff]  ;;  %v523_v46 = vld [vmem:[#allocation8 + $0x18] sm:$0xff] }
  0x52   :  { %1037 = vmatprep.mubr.msk.f32.mxu0 %vm122_vm1, %v106_v15  ;;  %1061 = vmatprep.subr.mxu1 %v345_v17  ;;  %v921_v47 = vld [vmem:[%s1476_s2] ss:$0 sm:$0xff]  ;;  %v520_v34 = vld [vmem:[#allocation8] sm:$0xff] }
  0x53   :  { %1062 = vmatpush3.msra.mxu1 %v345_v17  ;;  %1107 = vmatprep.subr.mxu0 %v534_v35 }
  0x54   :  { %1063 = vmatprep.subr.mxu1 %v344_v20  ;;  %1108 = vmatpush3.msra.mxu0 %v534_v35  ;;  %v939_v35 = vld [vmem:[#allocation7] ss:$0 sm:$0xff] }
  0x55   :  { %1038 = vmatmul.mubr.msk.f32.gmra.mxu0 %vm122_vm1, %v107_v18  ;;  %1064 = vmatpush3.msra.mxu1 %v344_v20 }
  0x56   :  { %1040 = vmatprep.mubr.msk.f32.mxu0 %vm122_vm1, %v108_v19  ;;  %1065 = vmatprep.subr.mxu1 %v343_v21 }
  0x57   :  { %1066 = vmatpush3.msra.mxu1 %v343_v21  ;;  %1109 = vmatprep.subr.mxu0 %v533_v36 }
  0x58   :  { %1067 = vmatprep.subr.mxu1 %v342_v24  ;;  %1110 = vmatpush3.msra.mxu0 %v533_v36 }
  0x59   :  { %1041 = vmatmul.mubr.msk.f32.gmra.mxu0 %vm122_vm1, %v109_v22  ;;  %1068 = vmatpush3.msra.mxu1 %v342_v24 }
  0x5a   :  { %1043 = vmatprep.mubr.msk.f32.mxu0 %vm122_vm1, %v110_v23  ;;  %1069 = vmatprep.subr.mxu1 %v341_v25 }
  0x5b   :  { %1070 = vmatpush3.msra.mxu1 %v341_v25  ;;  %1111 = vmatprep.subr.mxu0 %v532_v37 }
  0x5c   :  { %1071 = vmatprep.subr.mxu1 %v340_v28  ;;  %1112 = vmatpush3.msra.mxu0 %v532_v37 }
  0x5d   :  { %1044 = vmatmul.mubr.msk.f32.gmra.mxu0 %vm122_vm1, %v111_v26  ;;  %1072 = vmatpush3.msra.mxu1 %v340_v28 }
  0x5e   :  { %1046 = vmatprep.mubr.msk.f32.mxu0 %vm122_vm1, %v112_v27  ;;  %1073 = vmatprep.subr.mxu1 %v339_v30 }
  0x5f   :  { %1074 = vmatpush3.msra.mxu1 %v339_v30  ;;  %1113 = vmatprep.subr.mxu0 %v531_v38 }
  0x60   :  { %1075 = vmatprep.subr.mxu1 %v338_v31  ;;  %1114 = vmatpush3.msra.mxu0 %v531_v38 }
  0x61   :  { %1047 = vmatmul.mubr.msk.f32.gmra.mxu0 %vm122_vm1, %v113_v29  ;;  %1076 = vmatpush3.msra.mxu1 %v338_v31 }
  0x62   :  { %1077 = vmatprep.subr.mxu1 %v337_v32  ;;  %1115 = vmatprep.subr.mxu0 %v530_v39 }
  0x63   :  { %1078 = vmatpush3.msra.mxu1 %v337_v32  ;;  %1116 = vmatpush3.msra.mxu0 %v530_v39  ;;  %v522_v32 = vld [vmem:[#allocation8 + $0x10] sm:$0xff] }
  0x64   :  { %1079 = vmatprep.subr.mxu1 %v336_v33  ;;  %1117 = vmatprep.subr.mxu0 %v529_v40 }
  0x65   :  { %1080 = vmatpush3.msra.mxu1 %v336_v33  ;;  %1118 = vmatpush3.msra.mxu0 %v529_v40  ;;  %v521_v33 = vld [vmem:[#allocation8 + $0x8] sm:$0xff] }
  0x66   :  { %1119 = vmatprep.subr.mxu0 %v528_v41 }
  0x67   :  { %1120 = vmatpush3.msra.mxu0 %v528_v41 }
  0x68   :  { %1121 = vmatprep.subr.mxu0 %v527_v42 }
  0x69   :  { %1122 = vmatpush3.msra.mxu0 %v527_v42 }
  0x6a   :  { %1123 = vmatprep.subr.mxu0 %v526_v43 }
  0x6b   :  { %1124 = vmatpush3.msra.mxu0 %v526_v43 }
  0x6c   :  { %1125 = vmatprep.subr.mxu0 %v525_v44 }
  0x6d   :  { %1126 = vmatpush3.msra.mxu0 %v525_v44 }
  0x6e   :  { %1127 = vmatprep.subr.mxu0 %v524_v45 }
  0x6f   :  { %1128 = vmatpush3.msra.mxu0 %v524_v45 }
  0x70   :  { %1129 = vmatprep.subr.mxu0 %v523_v46 }
  0x71   :  { %1130 = vmatpush3.msra.mxu0 %v523_v46 }
  0x72   :  { %1131 = vmatprep.subr.mxu0 %v522_v32 }
  0x73   :  { %1132 = vmatpush3.msra.mxu0 %v522_v32 }
  0x74   :  { %1133 = vmatprep.subr.mxu0 %v521_v33 }
  0x75   :  { %1134 = vmatpush3.msra.mxu0 %v521_v33 }
  0x76   :  { %1135 = vmatprep.subr.mxu0 %v520_v34 }
  0x77   :  { %1136 = vmatpush3.msra.mxu0 %v520_v34 }
 0x105   :  { %v1027_v48 = vpop.f32.mrf.mxu0 }
 0x106   :  { %v247_v49 = vadd.f32 %v1027_v48, %v921_v47 }
 0x107   :  { %v241_v50 = vpop.f32.mrf.mxu0 }
 0x108   :  { %v242_v51 = vadd.f32 %v921_v47, %v241_v50  ;;  %v321_v54 = vmax.f32 %v247_v49, 0.0 }
 0x109   :  { %v1030_v52 = vpop.f32.mrf.mxu0 }
 0x10a   :  { %v320_v53 = vmax.f32 %v242_v51, 0.0  ;;  %v257_v55 = vadd.f32 %v1030_v52, %v921_v47 }
 0x10b   :  { %v251_v56 = vpop.f32.mrf.mxu0 }
 0x10c   :  { %v252_v57 = vadd.f32 %v921_v47, %v251_v56  ;;  %1081 = vmatprep.mubr.f32.mxu1 %v320_v53  ;;  %v323_v61 = vmax.f32 %v257_v55, 0.0 }
 0x10d   :  { %v1033_v58 = vpop.f32.mrf.mxu0  ;;  %1082 = vmatmul.mubr.f32.vlgmr.msra.gmra.mxu1 %v321_v54 }
 0x10e   :  { %v322_v59 = vmax.f32 %v252_v57, 0.0  ;;  %v267_v60 = vadd.f32 %v1033_v58, %v921_v47 }
 0x10f   :  { %v261_v62 = vpop.f32.mrf.mxu0 }
 0x110   :  { %v262_v63 = vadd.f32 %v921_v47, %v261_v62  ;;  %1084 = vmatprep.mubr.f32.mxu1 %v322_v59  ;;  %v325_v0 = vmax.f32 %v267_v60, 0.0 }
 0x111   :  { %1085 = vmatmul.mubr.f32.gmra.mxu1 %v323_v61  ;;  %v1036_v1 = vpop.f32.mrf.mxu0 }
 0x112   :  { %v324_v2 = vmax.f32 %v262_v63, 0.0  ;;  %v277_v3 = vadd.f32 %v1036_v1, %v921_v47 }
 0x113   :  { %v271_v4 = vpop.f32.mrf.mxu0 }
 0x114   :  { %1087 = vmatprep.mubr.f32.mxu1 %v324_v2  ;;  %v272_v5 = vadd.f32 %v921_v47, %v271_v4  ;;  %v327_v6 = vmax.f32 %v277_v3, 0.0 }
 0x115   :  { %1088 = vmatmul.mubr.f32.gmra.mxu1 %v325_v0  ;;  %v1039_v7 = vpop.f32.mrf.mxu0 }
 0x116   :  { %v326_v8 = vmax.f32 %v272_v5, 0.0  ;;  %v287_v9 = vadd.f32 %v1039_v7, %v921_v47 }
 0x117   :  { %v281_v10 = vpop.f32.mrf.mxu0 }
 0x118   :  { %1090 = vmatprep.mubr.f32.mxu1 %v326_v8  ;;  %v282_v11 = vadd.f32 %v921_v47, %v281_v10  ;;  %v329_v12 = vmax.f32 %v287_v9, 0.0 }
 0x119   :  { %1091 = vmatmul.mubr.f32.gmra.mxu1 %v327_v6  ;;  %v1042_v13 = vpop.f32.mrf.mxu0 }
 0x11a   :  { %v328_v14 = vmax.f32 %v282_v11, 0.0  ;;  %v297_v15 = vadd.f32 %v1042_v13, %v921_v47 }
 0x11b   :  { %v291_v16 = vpop.f32.mrf.mxu0 }
 0x11c   :  { %1093 = vmatprep.mubr.f32.mxu1 %v328_v14  ;;  %v292_v17 = vadd.f32 %v921_v47, %v291_v16  ;;  %v331_v18 = vmax.f32 %v297_v15, 0.0 }
 0x11d   :  { %1094 = vmatmul.mubr.f32.gmra.mxu1 %v329_v12  ;;  %v1045_v19 = vpop.f32.mrf.mxu0 }
 0x11e   :  { %v330_v20 = vmax.f32 %v292_v17, 0.0  ;;  %v307_v21 = vadd.f32 %v1045_v19, %v921_v47 }
 0x11f   :  { %v301_v22 = vpop.f32.mrf.mxu0 }
 0x120   :  { %1096 = vmatprep.mubr.f32.mxu1 %v330_v20  ;;  %v302_v23 = vadd.f32 %v921_v47, %v301_v22  ;;  %v333_v24 = vmax.f32 %v307_v21, 0.0  ;;  %v1284_v20 = vmov 0   ;;  %v1375_v21 = vld [vmem:[#allocation10] ss:$0 sm:$0xff] }
 0x121   :  { %1097 = vmatmul.mubr.f32.gmra.mxu1 %v331_v18  ;;  %v1048_v25 = vpop.f32.mrf.mxu0  ;;  %1169 = vset.pattern.permute.xlu1 %v1284_v20 }
 0x122   :  { %v332_v26 = vmax.f32 %v302_v23, 0.0  ;;  %v317_v27 = vadd.f32 %v1048_v25, %v921_v47  ;;  %1170 = vset.pattern.permute.xlu0 %v1284_v20  ;;  %v1381_v25 = vld [vmem:[%s1481_s7] ss:$0 sm:$0xff] }
 0x123   :  { %v311_v28 = vpop.f32.mrf.mxu0 }
 0x124   :  { %1099 = vmatprep.mubr.f32.mxu1 %v332_v26  ;;  %v312_v29 = vadd.f32 %v921_v47, %v311_v28  ;;  %v335_v30 = vmax.f32 %v317_v27, 0.0 }
 0x125   :  { %1100 = vmatmul.mubr.f32.gmra.mxu1 %v333_v24 }
 0x126   :  { %v334_v31 = vmax.f32 %v312_v29, 0.0 }
 0x128   :  { %1102 = vmatprep.mubr.f32.mxu1 %v334_v31 }
 0x129   :  { %1103 = vmatmul.mubr.f32.gmra.mxu1 %v335_v30 }
 0x1cd   :  { %v1083_v36 = vpop.f32.mrf.mxu1 }
 0x1ce   :  { %v431_v37 = vadd.f32 %v1083_v36, %v939_v35 }
 0x1cf   :  { %v425_v38 = vpop.f32.mrf.mxu1 }
 0x1d0   :  { %v426_v39 = vadd.f32 %v939_v35, %v425_v38  ;;  %v505_v42 = vmax.f32 %v431_v37, 0.0 }
 0x1d1   :  { %v1086_v40 = vpop.f32.mrf.mxu1 }
 0x1d2   :  { %v504_v41 = vmax.f32 %v426_v39, 0.0  ;;  %v441_v43 = vadd.f32 %v1086_v40, %v939_v35 }
 0x1d3   :  { %v435_v44 = vpop.f32.mrf.mxu1 }
 0x1d4   :  { %v436_v45 = vadd.f32 %v939_v35, %v435_v44  ;;  %1137 = vmatprep.mubr.f32.mxu0 %v504_v41  ;;  %v507_v48 = vmax.f32 %v441_v43, 0.0 }
 0x1d5   :  { %v1089_v46 = vpop.f32.mrf.mxu1  ;;  %1138 = vmatmul.mubr.f32.vlgmr.msra.gmra.mxu0 %v505_v42 }
 0x1d6   :  { %v506_v47 = vmax.f32 %v436_v45, 0.0  ;;  %v451_v49 = vadd.f32 %v1089_v46, %v939_v35 }
 0x1d7   :  { %v445_v50 = vpop.f32.mrf.mxu1 }
 0x1d8   :  { %v446_v51 = vadd.f32 %v939_v35, %v445_v50  ;;  %1140 = vmatprep.mubr.f32.mxu0 %v506_v47  ;;  %v509_v55 = vmax.f32 %v451_v49, 0.0 }
 0x1d9   :  { %1141 = vmatmul.mubr.f32.gmra.mxu0 %v507_v48  ;;  %v1092_v52 = vpop.f32.mrf.mxu1 }
 0x1da   :  { %v508_v53 = vmax.f32 %v446_v51, 0.0  ;;  %v461_v54 = vadd.f32 %v1092_v52, %v939_v35 }
 0x1db   :  { %v455_v56 = vpop.f32.mrf.mxu1 }
 0x1dc   :  { %1143 = vmatprep.mubr.f32.mxu0 %v508_v53  ;;  %v456_v57 = vadd.f32 %v939_v35, %v455_v56  ;;  %v511_v58 = vmax.f32 %v461_v54, 0.0 }
 0x1dd   :  { %1144 = vmatmul.mubr.f32.gmra.mxu0 %v509_v55  ;;  %v1095_v59 = vpop.f32.mrf.mxu1 }
 0x1de   :  { %v510_v60 = vmax.f32 %v456_v57, 0.0  ;;  %v471_v61 = vadd.f32 %v1095_v59, %v939_v35 }
 0x1df   :  { %v465_v62 = vpop.f32.mrf.mxu1 }
 0x1e0   :  { %1146 = vmatprep.mubr.f32.mxu0 %v510_v60  ;;  %v466_v63 = vadd.f32 %v939_v35, %v465_v62  ;;  %v513_v0 = vmax.f32 %v471_v61, 0.0 }
 0x1e1   :  { %1147 = vmatmul.mubr.f32.gmra.mxu0 %v511_v58  ;;  %v1098_v1 = vpop.f32.mrf.mxu1 }
 0x1e2   :  { %v512_v2 = vmax.f32 %v466_v63, 0.0  ;;  %v481_v3 = vadd.f32 %v1098_v1, %v939_v35 }
 0x1e3   :  { %v475_v4 = vpop.f32.mrf.mxu1 }
 0x1e4   :  { %1149 = vmatprep.mubr.f32.mxu0 %v512_v2  ;;  %v476_v5 = vadd.f32 %v939_v35, %v475_v4  ;;  %v515_v6 = vmax.f32 %v481_v3, 0.0 }
 0x1e5   :  { %1150 = vmatmul.mubr.f32.gmra.mxu0 %v513_v0  ;;  %v1101_v7 = vpop.f32.mrf.mxu1 }
 0x1e6   :  { %v514_v8 = vmax.f32 %v476_v5, 0.0  ;;  %v491_v9 = vadd.f32 %v1101_v7, %v939_v35 }
 0x1e7   :  { %v485_v10 = vpop.f32.mrf.mxu1 }
 0x1e8   :  { %1152 = vmatprep.mubr.f32.mxu0 %v514_v8  ;;  %v486_v11 = vadd.f32 %v939_v35, %v485_v10  ;;  %v517_v12 = vmax.f32 %v491_v9, 0.0 }
 0x1e9   :  { %1153 = vmatmul.mubr.f32.gmra.mxu0 %v515_v6  ;;  %v1104_v13 = vpop.f32.mrf.mxu1 }
 0x1ea   :  { %v516_v14 = vmax.f32 %v486_v11, 0.0  ;;  %v501_v15 = vadd.f32 %v1104_v13, %v939_v35  ;;  %v759_v11 = vld [vmem:[#allocation2] sm:$0x1] }
 0x1eb   :  { %v495_v16 = vpop.f32.mrf.mxu1 }
 0x1ec   :  { %1155 = vmatprep.mubr.f32.mxu0 %v516_v14  ;;  %v496_v17 = vadd.f32 %v939_v35, %v495_v16  ;;  %v519_v18 = vmax.f32 %v501_v15, 0.0 }
 0x1ed   :  { %1156 = vmatmul.mubr.f32.gmra.mxu0 %v517_v12 }
 0x1ee   :  { %v518_v19 = vmax.f32 %v496_v17, 0.0 }
 0x1f0   :  { %1158 = vmatprep.mubr.f32.mxu0 %v518_v19 }
 0x1f1   :  { %1159 = vmatmul.mubr.f32.gmra.mxu0 %v519_v18 }
 0x295   :  { %v1139_v22 = vpop.f32.mrf.mxu0 }
 0x296   :  { %v615_v23 = vadd.f32 %v1139_v22, %v1375_v21 }
 0x297   :  { %v609_v24 = vpop.f32.mrf.mxu0 }
 0x298   :  { %v689_v26 = vmax.f32 %v615_v23, 0.0  ;;  %v610_v27 = vadd.f32 %v1375_v21, %v609_v24 }
 0x299   :  { %v1142_v28 = vpop.f32.mrf.mxu0 }
 0x29a   :  { %v688_v29 = vmax.f32 %v610_v27, 0.0  ;;  %v625_v30 = vadd.f32 %v1142_v28, %v1375_v21  ;;  %v712_v31 = vmul.f32 %v1381_v25, %v689_v26 }
 0x29b   :  { %v619_v32 = vpop.f32.mrf.mxu0 }
 0x29c   :  { %v691_v33 = vmax.f32 %v625_v30, 0.0  ;;  %v620_v34 = vadd.f32 %v1375_v21, %v619_v32  ;;  %729 = vadd.xlane.f32.xlu0 %v712_v31  ;;  %v711_v39 = vmul.f32 %v1381_v25, %v688_v29 }
 0x29d   :  { %v1145_v35 = vpop.f32.mrf.mxu0 }
 0x29e   :  { %v690_v36 = vmax.f32 %v620_v34, 0.0  ;;  %v635_v37 = vadd.f32 %v1145_v35, %v1375_v21  ;;  %v714_v38 = vmul.f32 %v1381_v25, %v691_v33 }
 0x29f   :  { %v629_v40 = vpop.f32.mrf.mxu0 }
 0x2a0   :  { %v630_v41 = vadd.f32 %v1375_v21, %v629_v40  ;;  %733 = vadd.xlane.f32.xlu1 %v714_v38  ;;  %727 = vadd.xlane.f32.xlu0 %v711_v39  ;;  %v693_v43 = vmax.f32 %v635_v37, 0.0  ;;  %v713_v46 = vmul.f32 %v1381_v25, %v690_v36 }
 0x2a1   :  { %v1148_v42 = vpop.f32.mrf.mxu0 }
 0x2a2   :  { %v692_v44 = vmax.f32 %v630_v41, 0.0  ;;  %v645_v45 = vadd.f32 %v1148_v42, %v1375_v21  ;;  %v716_v53 = vmul.f32 %v1381_v25, %v693_v43 }
 0x2a3   :  { %v639_v47 = vpop.f32.mrf.mxu0 }
 0x2a4   :  { %v695_v48 = vmax.f32 %v645_v45, 0.0  ;;  %731 = vadd.xlane.f32.xlu1 %v713_v46  ;;  %v715_v49 = vmul.f32 %v1381_v25, %v692_v44  ;;  %v640_v50 = vadd.f32 %v1375_v21, %v639_v47 }
 0x2a5   :  { %v1151_v51 = vpop.f32.mrf.mxu0 }
 0x2a6   :  { %735 = vadd.xlane.f32.xlu0 %v715_v49  ;;  %v694_v52 = vmax.f32 %v640_v50, 0.0  ;;  %v718_v54 = vmul.f32 %v1381_v25, %v695_v48  ;;  %v655_v55 = vadd.f32 %v1151_v51, %v1375_v21 }
 0x2a7   :  { %v649_v56 = vpop.f32.mrf.mxu0 }
 0x2a8   :  { %737 = vadd.xlane.f32.xlu1 %v716_v53  ;;  %v697_v58 = vmax.f32 %v655_v55, 0.0  ;;  %v717_v59 = vmul.f32 %v1381_v25, %v694_v52  ;;  %v650_v60 = vadd.f32 %v1375_v21, %v649_v56 }
 0x2a9   :  { %v1154_v57 = vpop.f32.mrf.mxu0 }
 0x2aa   :  { %741 = vadd.xlane.f32.xlu0 %v718_v54  ;;  %v665_v61 = vadd.f32 %v1154_v57, %v1375_v21  ;;  %v696_v1 = vmax.f32 %v650_v60, 0.0  ;;  %v720_v2 = vmul.f32 %v1381_v25, %v697_v58 }
 0x2ab   :  { %v659_v62 = vpop.f32.mrf.mxu0 }
 0x2ac   :  { %v699_v63 = vmax.f32 %v665_v61, 0.0  ;;  %v660_v3 = vadd.f32 %v1375_v21, %v659_v62  ;;  %v719_v7 = vmul.f32 %v1381_v25, %v696_v1 }
 0x2ad   :  { %v1157_v0 = vpop.f32.mrf.mxu0 }
 0x2ae   :  { %739 = vadd.xlane.f32.xlu0 %v717_v59  ;;  %v722_v4 = vmul.f32 %v1381_v25, %v699_v63  ;;  %v698_v6 = vmax.f32 %v660_v3, 0.0  ;;  %v675_v8 = vadd.f32 %v1157_v0, %v1375_v21 }
 0x2af   :  { %v669_v5 = vpop.f32.mrf.mxu0 }
 0x2b0   :  { %v701_v10 = vmax.f32 %v675_v8, 0.0  ;;  %v721_v12 = vmul.f32 %v1381_v25, %v698_v6  ;;  %v670_v13 = vadd.f32 %v1375_v21, %v669_v5 }
 0x2b1   :  { %v1160_v9 = vpop.f32.mrf.mxu0 }
 0x2b2   :  { %745 = vadd.xlane.f32.xlu0 %v720_v2  ;;  %v700_v15 = vmax.f32 %v670_v13, 0.0  ;;  %v724_v16 = vmul.f32 %v1381_v25, %v701_v10  ;;  %v685_v18 = vadd.f32 %v1160_v9, %v1375_v21 }
 0x2b3   :  { %v679_v14 = vpop.f32.mrf.mxu0 }
 0x2b4   :  { %v680_v17 = vadd.f32 %v1375_v21, %v679_v14  ;;  %v723_v20 = vmul.f32 %v1381_v25, %v700_v15  ;;  %v703_v22 = vmax.f32 %v685_v18, 0.0  ;;  %v765_v21 = vlaneseq }
 0x2b6   :  { %743 = vadd.xlane.f32.xlu0 %v719_v7  ;;  %v702_v19 = vmax.f32 %v680_v17, 0.0  ;;  %v726_v24 = vmul.f32 %v1381_v25, %v703_v22  ;;  %v1414_v34 = vshrl.u32 %v765_v21, 7  ;;  %v1417_v36 = vand.u32 127, %v765_v21 }
 0x2b8   :  { %v725_v23 = vmul.f32 %v1381_v25, %v702_v19  ;;  %v767_v35 = vsub.s32 0, %v1414_v34  ;;  %v807_v39 = vadd.s32 4294967288, %v1417_v36  ;;  %v814_v40 = vadd.s32 4294967280, %v1417_v36 }
 0x2b9   :  { %762 = vperm.xlu1 %1169, %v759_v11   ;;  %v805_v44 = vsub.s32 %v1417_v36, %v1414_v34  ;;  %v821_v50 = vadd.s32 4294967272, %v1417_v36  ;;  %v828_v53 = vadd.s32 4294967264, %v1417_v36  ;;  %v835_v57 = vadd.s32 4294967256, %v1417_v36 }
 0x2ba   :  { %747 = vadd.xlane.f32.xlu0 %v721_v12  ;;  %v810_v45 = vsub.s32 %v807_v39, %v1414_v34  ;;  %v817_v47 = vsub.s32 %v814_v40, %v1414_v34  ;;  %v842_v63 = vadd.s32 4294967248, %v1417_v36  ;;  %v849_v5 = vadd.s32 4294967240, %v1417_v36 }
 0x2bb   :  { %v824_v56 = vsub.s32 %v821_v50, %v1414_v34  ;;  %v831_v60 = vsub.s32 %v828_v53, %v1414_v34  ;;  %v838_v2 = vsub.s32 %v835_v57, %v1414_v34  ;;  %v856_v8 = vadd.s32 4294967232, %v1417_v36 }
 0x2bc   :  { %v863_v11 = vadd.s32 4294967224, %v1417_v36  ;;  %v852_v14 = vsub.s32 %v849_v5, %v1414_v34  ;;  %v870_v18 = vadd.s32 4294967216, %v1417_v36  ;;  %v891_v21 = vadd.s32 4294967192, %v1417_v36 }
 0x2be   :  { %753 = vadd.xlane.f32.xlu0 %v724_v16  ;;  %v859_v16 = vsub.s32 %v856_v8, %v1414_v34  ;;  %v866_v22 = vsub.s32 %v863_v11, %v1414_v34 }
 0x2c2   :  { %751 = vadd.xlane.f32.xlu0 %v723_v20 }
 0x2c6   :  { %755 = vadd.xlane.f32.xlu0 %v725_v23 }
 0x2ca   :  { %757 = vadd.xlane.f32.xlu0 %v726_v24  ;;  %v877_v24 = vadd.s32 4294967208, %v1417_v36 }
 0x2dd   :  { %749 = vadd.xlane.f32.xlu1 %v722_v4  ;;  %v845_v4 = vsub.s32 %v842_v63, %v1414_v34 }
 0x325   :  { %v730_v26 = vpop.xlane.xlu0 %729 }
 0x329   :  { %v728_v27 = vpop.xlane.xlu0 %727  ;;  %v734_v28 = vpop.xlane.xlu1 %733 }
 0x32d   :  { %v732_v30 = vpop.xlane.xlu1 %731 }
 0x32f   :  { %v736_v29 = vpop.xlane.xlu0 %735 }
 0x331   :  { %v738_v32 = vpop.xlane.xlu1 %737 }
 0x333   :  { %v742_v31 = vpop.xlane.xlu0 %741 }
 0x335   :  { %v763_v37 = vpop.permute.xlu1 %762 }
 0x336   :  { %v1419_v25 = vrot.slane %v763_v37, %v767_v35  ;;  %v880_v35 = vsub.s32 %v877_v24, %v1414_v34 }
 0x337   :  { %v740_v33 = vpop.xlane.xlu0 %739 }
 0x338   :  { %v769_v42 = vadd.f32 %v1419_v25, %v728_v27  ;;  %v770_v43 = vadd.f32 %v1419_v25, %v730_v26  ;;  %v771_v46 = vadd.f32 %v1419_v25, %v732_v30  ;;  %v772_v54 = vadd.f32 %v1419_v25, %v734_v28 }
 0x339   :  { %v773_v58 = vadd.f32 %v1419_v25, %v736_v29  ;;  %v774_v0 = vadd.f32 %v1419_v25, %v738_v32  ;;  %v775_v7 = vadd.f32 %v1419_v25, %v740_v33  ;;  %v776_v13 = vadd.f32 %v1419_v25, %v742_v31 }
 0x33a   :  { %v806_v48 = vrot.slane %v769_v42, %v805_v44  ;;  %v811_v49 = vrot.slane %v770_v43, %v810_v45  ;;  %v818_v52 = vrot.slane %v771_v46, %v817_v47  ;;  %v825_v62 = vrot.slane %v772_v54, %v824_v56 }
 0x33b   :  { %v746_v38 = vpop.xlane.xlu0 %745  ;;  %v832_v3 = vrot.slane %v773_v58, %v831_v60  ;;  %v839_v10 = vrot.slane %v774_v0, %v838_v2  ;;  %v846_v15 = vrot.slane %v775_v7, %v845_v4  ;;  %v853_v23 = vrot.slane %v776_v13, %v852_v14 }
 0x33c   :  { %v813_v55 = vsel %vm812_vm2, %v811_v49, %v806_v48  ;;  %v873_v27 = vsub.s32 %v870_v18, %v1414_v34  ;;  %v884_v29 = vadd.s32 4294967200, %v1417_v36  ;;  %v778_v30 = vadd.f32 %v1419_v25, %v746_v38 }
 0x33d   :  { %v820_v59 = vsel %vm819_vm3, %v818_v52, %v813_v55  ;;  %v898_v32 = vadd.s32 4294967184, %v1417_v36  ;;  %v905_v33 = vadd.s32 4294967176, %v1417_v36  ;;  %v894_v44 = vsub.s32 %v891_v21, %v1414_v34 }
 0x33e   :  { %v827_v1 = vsel %vm826_vm4, %v825_v62, %v820_v59  ;;  %v887_v40 = vsub.s32 %v884_v29, %v1414_v34  ;;  %v867_v43 = vrot.slane %v778_v30, %v866_v22 }
 0x33f   :  { %v744_v41 = vpop.xlane.xlu0 %743  ;;  %v834_v6 = vsel %vm833_vm5, %v832_v3, %v827_v1  ;;  %v901_v36 = vsub.s32 %v898_v32, %v1414_v34  ;;  %v908_v48 = vsub.s32 %v905_v33, %v1414_v34 }
 0x340   :  { %v841_v12 = vsel %vm840_vm6, %v839_v10, %v834_v6  ;;  %v777_v17 = vadd.f32 %v1419_v25, %v744_v41 }
 0x341   :  { %v848_v19 = vsel %vm847_vm7, %v846_v15, %v841_v12 }
 0x342   :  { %v860_v26 = vrot.slane %v777_v17, %v859_v16  ;;  %v855_v31 = vsel %vm854_vm8, %v853_v23, %v848_v19 }
 0x343   :  { %v748_v51 = vpop.xlane.xlu0 %747 }
 0x344   :  { %v779_v28 = vadd.f32 %v1419_v25, %v748_v51  ;;  %v862_v37 = vsel %vm861_vm9, %v860_v26, %v855_v31 }
 0x345   :  { %v869_v49 = vsel %vm868_vm10, %v867_v43, %v862_v37 }
 0x346   :  { %v874_v39 = vrot.slane %v779_v28, %v873_v27 }
 0x347   :  { %v754_v61 = vpop.xlane.xlu0 %753 }
 0x348   :  { %v782_v45 = vadd.f32 %v1419_v25, %v754_v61  ;;  %v876_v52 = vsel %vm875_vm11, %v874_v39, %v869_v49 }
 0x34a   :  { %v895_v54 = vrot.slane %v782_v45, %v894_v44 }
 0x34b   :  { %v752_v9 = vpop.xlane.xlu0 %751 }
 0x34c   :  { %v781_v41 = vadd.f32 %v1419_v25, %v752_v9 }
 0x34e   :  { %v888_v53 = vrot.slane %v781_v41, %v887_v40 }
 0x34f   :  { %v756_v20 = vpop.xlane.xlu0 %755 }
 0x350   :  { %v783_v47 = vadd.f32 %v1419_v25, %v756_v20 }
 0x352   :  { %v902_v56 = vrot.slane %v783_v47, %v901_v36 }
 0x353   :  { %v758_v42 = vpop.xlane.xlu0 %757 }
 0x354   :  { %v784_v50 = vadd.f32 %v1419_v25, %v758_v42 }
 0x356   :  { %v909_v58 = vrot.slane %v784_v50, %v908_v48 }
 0x366   :  { %v750_v38 = vpop.xlane.xlu1 %749 }
 0x367   :  { %v780_v46 = vadd.f32 %v1419_v25, %v750_v38 }
 0x369   :  { %v881_v51 = vrot.slane %v780_v46, %v880_v35 }
 0x36b   :  { %v883_v55 = vsel %vm882_vm12, %v881_v51, %v876_v52 }
 0x36c   :  { %v890_v57 = vsel %vm889_vm13, %v888_v53, %v883_v55 }
 0x36d   :  { %v897_v59 = vsel %vm896_vm14, %v895_v54, %v890_v57 }
 0x36e   :  { %v904_v34 = vsel %vm903_vm15, %v902_v56, %v897_v59 }
 0x36f   :  { %v911_v60 = vsel %vm910_vm0, %v909_v58, %v904_v34 }
 0x370   :  { %913 = vst [vmem:[%s1483_s9] sm:$0x1] %v911_v60 }
 0x371   :  { %918 = vsyncpa [#allocation4], 1 }
 0x372   :  { %919 = vsyncpa [#allocation6], 1 }
 0x373   :  { %920 = vsyncpa [#allocation9], 1 }

</bundles_post_ra>
